<compile_context>
chip_gen: v7x
topology: tpu7x:2x2x1
jax: 0.10.0
libtpu: 0.0.40
codegen_flags: <defaults>
</compile_context>

<pallas_src>
import functools

import numpy as np
import jax
import jax.numpy as jnp
from jax.experimental import pallas as pl
from jax.experimental.pallas import tpu as pltpu


def _ece_tile_kernel(n_total, n_bins, bpad, tile_n, islogit,
                     logits_ref, labels_ref, part_ref):
    xn = logits_ref[...]                           # (T, C) native dtype
    labels = labels_ref[...]                       # (T, 1) int32
    t, c = xn.shape

    # max / argmax on the native dtype (bf16 packs 2x per vreg); the max is an
    # element of x so its f32 cast is exact -> conf and bins are unchanged.
    mn = jnp.max(xn, axis=-1, keepdims=True)                      # (T, 1)
    idx = jax.lax.broadcasted_iota(jnp.int32, xn.shape, 1)        # (T, C)
    # first-argmax over classes (torch.max tie-break = lowest index)
    pred = jnp.min(jnp.where(xn == mn, idx, c), axis=-1, keepdims=True)

    m = mn.astype(jnp.float32)
    if islogit:
        # confidence without materialising the softmax; (x - m) MUST be f32 so
        # bin assignment matches the reference.
        x = xn.astype(jnp.float32)
        s = jnp.sum(jnp.exp(x - m), axis=-1, keepdims=True)       # (T, 1)
        conf = 1.0 / s                     # max(softmax) == 1/s (exact divide)
    else:
        conf = m                           # inputs are already probabilities

    acc = (pred == labels).astype(jnp.float32)                    # (T, 1)

    # Fold the row-validity mask (last partial tile / stale VMEM rows) into
    # the narrow (T,1) payload instead of the (T,BPAD) bin mask.
    row = (jax.lax.broadcasted_iota(jnp.int32, (t, 1), 0)
           + pl.program_id(0) * tile_n)
    d = jnp.where(row < n_total, conf - acc, 0.0)                 # (T, 1)

    # bin boundaries from an iota: bin b = (b/n_bins, (b+1)/n_bins];
    # padded bin lanes (b >= n_bins) have lower >= 1.0 -> never match.
    # TODO(synk): boundaries are b/n_bins, which can differ by 1 ULP from
    # torch.linspace(0,1,n_bins+1) for confidences landing exactly on an
    # interior boundary.
    b = jax.lax.broadcasted_iota(jnp.int32, (1, bpad), 1).astype(jnp.float32)
    lo = b / float(n_bins)
    hi = (b + 1.0) / float(n_bins)
    in_bin = (conf > lo) & (conf <= hi)                           # (T, BPAD)

    # fused reduction: sum_conf_b - sum_acc_b == sum_n in_bin * (conf - acc)
    bins = jnp.sum(jnp.where(in_bin, d, 0.0), axis=0, keepdims=True)  # (1,BPAD)

    part_ref[...] = jnp.broadcast_to(bins, part_ref.shape)        # (1, 8, BPAD)


def ece_loss(logits, labels, n_bins=15, islogit=True):
    """Pallas implementation of _ECELoss.forward.  Returns shape (1,) f32."""
    n, c = logits.shape
    itemsize = int(np.dtype(logits.dtype).itemsize)
    pack = max(8, 32 // itemsize)                  # sublane packing multiple

    # ---- tile_n: big enough to amortise ~0.35us/step, small enough for VMEM.
    target_rows = max(512, (2 * 1024 * 1024) // max(1, c * itemsize))
    # per-row working set: 2x double-buffered native logits, 2x lane-padded
    # labels, in-kernel f32 cast + exp + argmax-iota/where temporaries, and
    # the (T,128) in_bin / select intermediates.
    row_bytes = (2 * c * itemsize          # double-buffered logits
                 + 2 * 128 * 4             # double-buffered labels (lane pad)
                 + 4 * c * 4               # f32 cast, exp, iota, where temps
                 + 2 * 128 * 4)            # (T,128) in_bin / select temps
    vmem_budget = 24 * 1024 * 1024         # safe on v5e/v6e/v7x after limit
    budget_rows = max(pack, vmem_budget // row_bytes)
    tile_n = min(target_rows, budget_rows)

    # guarantee >= 2 grid tiles where possible so v7x's two TCs both get work
    if n >= 2 * pack:
        half = ((((n + 1) // 2) + pack - 1) // pack) * pack
        tile_n = min(tile_n, half)

    if tile_n >= n:
        tile_n = n                          # single full block
    else:
        tile_n = max(pack, (tile_n // pack) * pack)

    num_tiles = pl.cdiv(n, tile_n)
    bpad = max(128, -(-n_bins // 128) * 128)       # lane-aligned bin axis

    labels2d = labels.astype(jnp.int32).reshape(n, 1)

    kernel = functools.partial(_ece_tile_kernel, n, n_bins, bpad, tile_n,
                               bool(islogit))

    # ---- VMEM limit: always set it explicitly (v5e default scoped is only
    # 16 MiB), capped by the physical VMEM of the current chip (64 MiB v7x).
    vmem_need = tile_n * row_bytes + 2 * 8 * bpad * 4
    try:
        vmem_cap = int(pltpu.get_tpu_info().vmem_capacity_bytes)
    except Exception:  # noqa: BLE001 - conservative fallback (v7x per-TC)
        vmem_cap = 64 * 1024 * 1024
    limit = min(int(vmem_need * 3 // 2) + (1 << 20), (vmem_cap * 3) // 4)
    limit = max(limit, 16 * 1024 * 1024)

    cost = pl.CostEstimate(
        flops=int(6 * n * c),
        transcendentals=int(n * c) if islogit else 0,
        bytes_accessed=int(n * c * itemsize + n * 4 + num_tiles * 8 * bpad * 4),
    )

    partials = pl.pallas_call(
        kernel,
        out_shape=jax.ShapeDtypeStruct((num_tiles, 8, bpad), jnp.float32),
        grid=(num_tiles,),
        in_specs=[
            pl.BlockSpec((tile_n, c), lambda i: (i, 0)),   # native-dtype DMA
            pl.BlockSpec((tile_n, 1), lambda i: (i, 0)),
        ],
        out_specs=pl.BlockSpec((1, 8, bpad), lambda i: (i, 0, 0)),
        compiler_params=pltpu.CompilerParams(
            dimension_semantics=("parallel",),
            vmem_limit_bytes=int(limit)),
        cost_estimate=cost,
    )(logits, labels2d)

    # Combine: sum partials over tiles per bin FIRST (abs is nonlinear), then
    # |gap| summed over bins, scaled by the compile-time constant 1/N.
    per_bin = jnp.sum(partials[:, 0, :], axis=0)       # (BPAD,)
    ece = jnp.sum(jnp.abs(per_bin)) * (1.0 / n)
    return ece.reshape(1).astype(jnp.float32)


def _ece_reference(logits, labels, n_bins=15, islogit=True):
    """Plain-JAX transcription of the PyTorch loop (for verification)."""
    x = logits.astype(jnp.float32)
    probs = jax.nn.softmax(x, axis=1) if islogit else x
    conf = jnp.max(probs, axis=1)
    pred = jnp.argmax(probs, axis=1)
    acc = (pred == labels).astype(jnp.float32)
    bb = np.linspace(0.0, 1.0, n_bins + 1)
    ece = jnp.float32(0.0)
    for lo, hi in zip(bb[:-1], bb[1:]):
        in_bin = (conf > lo) & (conf <= hi)
        cnt = jnp.sum(in_bin.astype(jnp.float32))
        prop = cnt / conf.shape[0]
        acc_in = jnp.sum(jnp.where(in_bin, acc, 0.0)) / jnp.maximum(cnt, 1.0)
        conf_in = jnp.sum(jnp.where(in_bin, conf, 0.0)) / jnp.maximum(cnt, 1.0)
        ece = ece + jnp.where(cnt > 0, jnp.abs(conf_in - acc_in) * prop, 0.0)
    return ece


if __name__ == "__main__":
    key = jax.random.PRNGKey(0)
    k1, k2, k3, k4, k5, k6 = jax.random.split(key, 6)

    # Case 1: small f32, single tile.
    n1, c1 = 8, 32
    logits1 = 3.0 * jax.random.normal(k1, (n1, c1), dtype=jnp.float32)
    labels1 = jax.random.randint(k2, (n1,), 0, c1, dtype=jnp.int32)
    ece1 = ece_loss(logits1, labels1, n_bins=15, islogit=True)
    jax.block_until_ready(ece1)
    ref1 = _ece_reference(logits1, labels1, n_bins=15)
    assert np.allclose(np.asarray(ece1)[0], float(ref1), atol=1e-5), (ece1, ref1)

    # Case 2: bf16 logits, >=2 tiles with a partial last tile (exercises
    # native-dtype DMA / bf16 max+argmax, row masking, parallel-grid combine).
    n2, c2 = 100, 16
    logits2 = (2.0 * jax.random.normal(k3, (n2, c2), dtype=jnp.float32)
               ).astype(jnp.bfloat16)
    labels2 = jax.random.randint(k4, (n2,), 0, c2, dtype=jnp.int32)
    ece2 = ece_loss(logits2, labels2, n_bins=15, islogit=True)
    jax.block_until_ready(ece2)
    ref2 = _ece_reference(logits2, labels2, n_bins=15)
    assert np.allclose(np.asarray(ece2)[0], float(ref2), atol=1e-4), (ece2, ref2)

    # Case 3: class count not a multiple of 8/128 (padded-lane masking of the
    # class-axis reductions), f32, 2 tiles.
    n3, c3 = 24, 10
    logits3 = 2.5 * jax.random.normal(k5, (n3, c3), dtype=jnp.float32)
    labels3 = jax.random.randint(k6, (n3,), 0, c3, dtype=jnp.int32)
    ece3 = ece_loss(logits3, labels3, n_bins=15, islogit=True)
    jax.block_until_ready(ece3)
    ref3 = _ece_reference(logits3, labels3, n_bins=15)
    assert np.allclose(np.asarray(ece3)[0], float(ref3), atol=1e-5), (ece3, ref3)

    print("KERNEL_OK")
</pallas_src>

<mosaic_0001>
module attributes {stable_mosaic.version = 11 : i64} {
  func.func @_ece_tile_kernel(%arg0: i32, %arg1: memref<8x32xf32, #tpu.memory_space<vmem>>, %arg2: memref<8x1xi32, #tpu.memory_space<vmem>>, %arg3: memref<1x8x128xf32, #tpu.memory_space<vmem>>) attributes {dimension_semantics = [#tpu.dimension_semantics<parallel>], iteration_bounds = array<i64: 1>, scalar_prefetch = 0 : i64, scratch_operands = 0 : i64, tpu.core_type = #tpu.core_type<tc>, window_params = [{transform_indices = @transform_0, window_bounds = array<i64: 8, 32>}, {transform_indices = @transform_1, window_bounds = array<i64: 8, 1>}, {transform_indices = @transform_2, window_bounds = array<i64: 1, 8, 128>}]} {
    %c0 = arith.constant 0 : index
    %c0_0 = arith.constant 0 : index
    %0 = vector.load %arg1[%c0, %c0_0] : memref<8x32xf32, #tpu.memory_space<vmem>>, vector<8x32xf32>
    %c0_1 = arith.constant 0 : index
    %c0_2 = arith.constant 0 : index
    %1 = vector.load %arg2[%c0_1, %c0_2] : memref<8x1xi32, #tpu.memory_space<vmem>>, vector<8x1xi32>
    %cst = arith.constant dense<0xFF800000> : vector<8xf32>
    %2 = vector.multi_reduction <maximumf>, %0, %cst [1] : vector<8x32xf32> to vector<8xf32>
    %3 = vector.shape_cast %2 : vector<8xf32> to vector<8x1xf32>
    %4 = tpu.iota {dimensions = array<i32: 1>} : vector<8x32xi32>
    %5 = vector.broadcast %3 : vector<8x1xf32> to vector<8x32xf32>
    %6 = arith.cmpf oeq, %0, %5 : vector<8x32xf32>
    %c32_i32 = arith.constant 32 : i32
    %7 = vector.broadcast %c32_i32 : i32 to vector<8x32xi32>
    %8 = arith.select %6, %4, %7 : vector<8x32xi1>, vector<8x32xi32>
    %cst_3 = arith.constant dense<2147483647> : vector<8xi32>
    %9 = vector.multi_reduction <minsi>, %8, %cst_3 [1] : vector<8x32xi32> to vector<8xi32>
    %10 = vector.shape_cast %9 : vector<8xi32> to vector<8x1xi32>
    %11 = vector.broadcast %3 : vector<8x1xf32> to vector<8x32xf32>
    %12 = arith.subf %0, %11 : vector<8x32xf32>
    %13 = math.exp %12 : vector<8x32xf32>
    %cst_4 = arith.constant dense<0.000000e+00> : vector<8xf32>
    %14 = vector.multi_reduction <add>, %13, %cst_4 [1] : vector<8x32xf32> to vector<8xf32>
    %15 = vector.shape_cast %14 : vector<8xf32> to vector<8x1xf32>
    %cst_5 = arith.constant 1.000000e+00 : f32
    %16 = vector.broadcast %cst_5 : f32 to vector<8x1xf32>
    %17 = arith.divf %16, %15 : vector<8x1xf32>
    %18 = arith.cmpi eq, %10, %1 : vector<8x1xi32>
    %19 = arith.extui %18 : vector<8x1xi1> to vector<8x1xi32>
    %20 = arith.sitofp %19 : vector<8x1xi32> to vector<8x1xf32>
    %21 = tpu.iota {dimensions = array<i32: 0>} : vector<8x1xi32>
    %c8_i32 = arith.constant 8 : i32
    %22 = arith.muli %arg0, %c8_i32 : i32
    %23 = vector.broadcast %22 : i32 to vector<8x1xi32>
    %24 = arith.addi %21, %23 : vector<8x1xi32>
    %c8_i32_6 = arith.constant 8 : i32
    %25 = vector.broadcast %c8_i32_6 : i32 to vector<8x1xi32>
    %26 = arith.cmpi slt, %24, %25 : vector<8x1xi32>
    %27 = arith.subf %17, %20 : vector<8x1xf32>
    %cst_7 = arith.constant 0.000000e+00 : f32
    %28 = vector.broadcast %cst_7 : f32 to vector<8x1xf32>
    %29 = arith.select %26, %27, %28 : vector<8x1xi1>, vector<8x1xf32>
    %30 = tpu.iota {dimensions = array<i32: 1>} : vector<1x128xi32>
    %31 = arith.sitofp %30 : vector<1x128xi32> to vector<1x128xf32>
    %cst_8 = arith.constant 1.500000e+01 : f32
    %32 = vector.broadcast %cst_8 : f32 to vector<1x128xf32>
    %33 = arith.divf %31, %32 : vector<1x128xf32>
    %cst_9 = arith.constant 1.000000e+00 : f32
    %34 = vector.broadcast %cst_9 : f32 to vector<1x128xf32>
    %35 = arith.addf %31, %34 : vector<1x128xf32>
    %cst_10 = arith.constant 1.500000e+01 : f32
    %36 = vector.broadcast %cst_10 : f32 to vector<1x128xf32>
    %37 = arith.divf %35, %36 : vector<1x128xf32>
    %38 = vector.broadcast %17 : vector<8x1xf32> to vector<8x128xf32>
    %39 = vector.broadcast %33 : vector<1x128xf32> to vector<8x128xf32>
    %40 = arith.cmpf ogt, %38, %39 : vector<8x128xf32>
    %41 = vector.broadcast %17 : vector<8x1xf32> to vector<8x128xf32>
    %42 = vector.broadcast %37 : vector<1x128xf32> to vector<8x128xf32>
    %43 = arith.cmpf ole, %41, %42 : vector<8x128xf32>
    %44 = arith.andi %40, %43 : vector<8x128xi1>
    %cst_11 = arith.constant 0.000000e+00 : f32
    %45 = vector.shape_cast %29 : vector<8x1xf32> to vector<8x1xf32>
    %46 = vector.broadcast %45 : vector<8x1xf32> to vector<8x128xf32>
    %47 = vector.broadcast %cst_11 : f32 to vector<8x128xf32>
    %48 = arith.select %44, %46, %47 : vector<8x128xi1>, vector<8x128xf32>
    %cst_12 = arith.constant dense<0.000000e+00> : vector<128xf32>
    %49 = vector.multi_reduction <add>, %48, %cst_12 [0] : vector<8x128xf32> to vector<128xf32>
    %50 = vector.shape_cast %49 : vector<128xf32> to vector<1x128xf32>
    %51 = vector.shape_cast %50 : vector<1x128xf32> to vector<1x1x128xf32>
    %52 = vector.broadcast %51 : vector<1x1x128xf32> to vector<1x8x128xf32>
    %c0_13 = arith.constant 0 : index
    %c0_14 = arith.constant 0 : index
    %c0_15 = arith.constant 0 : index
    %53 = vector.load %arg3[%c0_13, %c0_14, %c0_15] : memref<1x8x128xf32, #tpu.memory_space<vmem>>, vector<1x8x128xf32>
    tpu.vector_store %arg3[%c0_13, %c0_14, %c0_15], %52 {strides = array<i32>} : memref<1x8x128xf32, #tpu.memory_space<vmem>>, vector<1x8x128xf32>,
    return
  }
  func.func @transform_0(%arg0: i32) -> (i32, i32) {
    %c0_i32 = arith.constant 0 : i32
    %c0_i32_0 = arith.constant 0 : i32
    return %arg0, %c0_i32 : i32, i32
  }
  func.func @transform_1(%arg0: i32) -> (i32, i32) {
    %c0_i32 = arith.constant 0 : i32
    %c0_i32_0 = arith.constant 0 : i32
    return %arg0, %c0_i32 : i32, i32
  }
  func.func @transform_2(%arg0: i32) -> (i32, i32, i32) {
    %c0_i32 = arith.constant 0 : i32
    %c0_i32_0 = arith.constant 0 : i32
    %c0_i32_1 = arith.constant 0 : i32
    return %arg0, %c0_i32, %c0_i32_0 : i32, i32, i32
  }
}

</mosaic_0001>

<bundles_post_ra>
// kernel: tpu_custom_call.1
= control target key start
LH: loop header
LB: loop body
LE: loop exit
PB: predicated region body
PF: predicated region fallthrough
CT: control target
= control target key end

     0   :  { %vm14_vm0 = vcmask 261120   ;;  %s163_s0 = inlined_call_operand.vmem [shape: f32[8,32], index: 0, kind: input, shape index: {}]   ;;  %s164_s1 = inlined_call_operand.vmem [shape: s32[8,1], index: 1, kind: input, shape index: {}]   ;;  %s165_s2 = inlined_call_operand.hbm [shape: f32[1,8,128], index: 2, kind: output, shape index: {}]  }
   0x1   :  { %v12_v0 = vld [vmem:[%s163_s0] sm:$0xff] }
   0x2   :  { %7 = vsyncpa [#allocation3], 0  ;;  %v15_v1 = vsel %vm14_vm0, %v12_v0, -inf  ;;  %v18_v2 = vlaneseq  ;;  %v124_v17 = vmov 0   ;;  %v13_v23 = vld [vmem:[%s164_s1] sm:$0xff]  ;;  %v125_v26 = vmov 0.0  }
   0x3   :  { %16 = vmax.xlane.f32.xlu0 %v15_v1  ;;  %s126_s1 = smov [#allocation2]  }
   0x4   :  { %v19_v3 = vand.u32 127, %v18_v2  ;;  %95 = vset.pattern.permute.xlu0 %v124_v17  ;;  %s83_s12 = sshll.u32 %s126_s1, 4  ;;  %s84_s12 = int_to_ptr.vmem [resolvable:$true] %s83_s12 }
   0x5   :  { %s100_s13 = scalar_lea.vmem %s84_s12, 128  ;;  %p105_p1 = scmp.lt.s32.totalorder %s84_s12, %s84_s12 }
   0x6   :  { %v56_v29 = vcvt.s32.f32 %v19_v3  ;;  %p101_p0 = scmp.ne.s32.totalorder %s84_s12, %s100_s13  ;;  %p106_p2 = scmp.lt.s32.totalorder %s100_s13, %s100_s13 }
   0x8   :  { %v59_v30 = vadd.f32 1.0, %v56_v29  ;;  %v58_v31 = vmul.f32 0.06666667, %v56_v29  ;;  %p107_p3 = por %p106_p2, %p105_p1 }
   0xa   :  { %v60_v32 = vmul.f32 0.06666667, %v59_v30  ;;  %p108_p4 = pnand %p107_p3, %p101_p0 }
  0x90   :  { %v17_v4 = vpop.xlane.xlu0 %16 }
  0x91   :  { %vm20_vm1 = vcmp.eq.f32.partialorder %v12_v0, %v17_v4  ;;  %v37_v5 = vsub.f32 %v12_v0, %v17_v4 }
  0x92   :  { %v21_v6 = vsel %vm20_vm1, %v19_v3, 32 }
  0x93   :  { %v38_v7 = vmul.f32 1.442695, %v37_v5  ;;  %v22_v8 = vsel %vm14_vm0, %v21_v6, 2147483647 }
  0x94   :  { %v24_v9 = vshra.s32 %v22_v8, 16  ;;  %v23_v13 = vand.u32 65535, %v22_v8 }
  0x95   :  { %96 = vpow2.f32 %v38_v7 }
  0x96   :  { %v26_v10 = vcvt.s32.f32 %v24_v9  ;;  %v25_v15 = vcvt.s32.f32 %v23_v13 }
  0x98   :  { %27 = vmin.xlane.f32.xlu0 %v26_v10 }
  0x9f   :  { %v97_v11 = vpop.eup %96 }
  0xa0   :  { %v40_v12 = vsel %vm14_vm0, %v97_v11, 0.0 }
  0xa1   :  { %41 = vadd.xlane.f32.xlu1 %v40_v12 }
 0x125   :  { %v28_v14 = vpop.xlane.xlu0 %27 }
 0x126   :  { %vm29_vm2 = vcmp.eq.f32.partialorder %v26_v10, %v28_v14  ;;  %v34_v19 = vcvt.f32.s32 %v28_v14 }
 0x127   :  { %v30_v16 = vsel %vm29_vm2, %v25_v15, inf }
 0x128   :  { %31 = vmin.xlane.f32.xlu1 %v30_v16  ;;  %v35_v21 = vshll.u32 %v34_v19, 16 }
 0x12e   :  { %v42_v18 = vpop.xlane.xlu1 %41 }
 0x12f   :  { %98 = vrcp.f32 %v42_v18 }
 0x139   :  { %v99_v25 = vpop.eup %98 }
 0x13a   :  { %vm61_vm4 = vcmp.gt.f32.partialorder %v99_v25, %v58_v31  ;;  %vm62_vm5 = vcmp.le.f32.partialorder %v99_v25, %v60_v32 }
 0x13b   :  { %vm63_vm6 = vmand %vm61_vm4, %vm62_vm5 }
 0x1b5   :  { %v32_v20 = vpop.xlane.xlu1 %31 }
 0x1b6   :  { %v33_v22 = vcvt.f32.s32 %v32_v20 }
 0x1b8   :  { %v36_v24 = vadd.s32 %v35_v21, %v33_v22 }
 0x1ba   :  { %vm45_vm3 = vcmp.eq.s32.totalorder %v36_v24, %v13_v23 }
 0x1bb   :  { %v91_v27 = vsel %vm45_vm3, 1.0, %v125_v26 }
 0x1bc   :  { %v54_v28 = vsub.f32 %v99_v25, %v91_v27 }
 0x1be   :  { %66 = vperm.xlu0 %95, %v54_v28  }
 0x23d   :  { %v67_v33 = vpop.permute.xlu0 %66 }
 0x23e   :  { %v69_v34 = vsel %vm63_vm6, %v67_v33, 0.0 }
 0x23f   :  { %v70_v35 = vrot.slane %v69_v34, 4 }
 0x241   :  { %v71_v36 = vadd.f32 %v70_v35, %v69_v34 }
 0x243   :  { %v72_v37 = vrot.slane %v71_v36, 2 }
 0x245   :  { %v73_v38 = vadd.f32 %v72_v37, %v71_v36 }
 0x247   :  { %v74_v39 = vrot.slane %v73_v38, 1 }
 0x249   :  { %v75_v40 = vadd.f32 %v74_v39, %v73_v38 }
 0x24b   :  { %76 = vst [vmem:[#allocation2] sm:$0xff] %v75_v40 }
 0x24c   :  { %111 = shalt.err (!%p108_p4)
}
 0x24d   :  { %s112_s16 = scalar_lea.hbm %s165_s2, 128 }
 0x24e   :  { %p113_p5 = scmp.ne.s32.totalorder %s165_s2, %s112_s16  ;;  %p116_p6 = scmp.lt.u32.totalorder %s112_s16, %s165_s2 }
 0x250   :  { %p118_p7 = pnand %p116_p6, %p113_p5 }
 0x252   :  { %121 = shalt.err (!%p118_p7)
}
 0x253   :  { %86 = dma.vmem_to_hbm [thread:$0]  %s84_s12, 128, %s165_s2, [#allocation3]  }
 0x254   :  { %122 = dma.done.wait [#allocation3], 128  }
 0x255   :  { %123 = vsyncadd [#allocation3], 4294967168 }
 0x256   :  { %90 = vsyncpa [#allocation3], 1 }

</bundles_post_ra>
